<compile_context>
chip_gen: v7x
topology: tpu7x:2x2x1
jax: 0.10.0
libtpu: 0.0.40
codegen_flags: <defaults>
</compile_context>

<pallas_src>
import functools

import jax
import jax.numpy as jnp
from jax import lax
from jax.experimental import pallas as pl
from jax.experimental.pallas import tpu as pltpu

LANE = 128
SUBLANE = 8


def _round_up(x, m):
    return (x + m - 1) // m * m


def rnn_seq_kernel(x_ref, h0_ref, wx_ref, wh_ref, b_ref, out_ref, hid_ref,
                   pre_ref, *, Tb, Bp, Hp, T):
    """One grid step processes Tb timesteps.

    x_ref   : [Tb*Bp, Ip]   bf16, streamed per block
    h0_ref  : [Bp, Hp]      f32, loaded once
    wx_ref  : [Ip, 2*Hp]    bf16, resident packed (i2h | i2o) slab
    wh_ref  : [Hp, 2*Hp]    bf16, resident packed (i2h | i2o) slab
    b_ref   : [1, 2*Hp]     f32, resident; i2o padding lanes = -1e30
    out_ref : [Tb*Bp, Hp]   f32 log-probs for the block (lane-dense)
    hid_ref : [Bp, Hp]      f32 resident hidden carry / final hidden
    pre_ref : [Tb*Bp, 2*Hp] f32 VMEM scratch for the hoisted input projection
    """
    tb = pl.program_id(0)

    # Initialize the resident hidden carry from h0 on the first grid step.
    @pl.when(tb == 0)
    def _():
        hid_ref[...] = h0_ref[...]

    # ---- Hoisted input projection + bias: one batched MXU matmul per block.
    pre_ref[...] = (jnp.dot(x_ref[...], wx_ref[...],
                            preferred_element_type=jnp.float32)
                    + b_ref[...])

    wh = wh_ref[...]  # resident packed recurrent weights (bf16)

    def step(i, h):
        r0 = pl.multiple_of(i * Bp, Bp)
        # Serial critical path: one MXU push (h @ Wh) + VPU add + log-softmax.
        acc = pre_ref[pl.ds(r0, Bp), :] + jnp.dot(
            h.astype(jnp.bfloat16), wh, preferred_element_type=jnp.float32)

        new_h = acc[:, :Hp]      # i2h result (f32)
        logits = acc[:, Hp:]     # i2o result; padding lanes already ~ -1e30

        m = jnp.max(logits, axis=1, keepdims=True)
        lse = m + jnp.log(jnp.sum(jnp.exp(logits - m), axis=1, keepdims=True))
        out_ref[pl.ds(r0, Bp), :] = logits - lse

        if T % Tb != 0:
            # Don't advance the carry on padded timesteps of the last block.
            new_h = jnp.where(tb * Tb + i < T, new_h, h)
        return new_h

    hid_ref[...] = lax.fori_loop(0, Tb, step, hid_ref[...], unroll=True)


def init_raw_params(key, input_size, hidden_size):
    """Torch-layout params: Linear weight [out, in], bias [out], U(+/-1/sqrt(fan_in))."""
    fan_in = input_size + hidden_size
    bound = 1.0 / (fan_in ** 0.5)
    k = jax.random.split(key, 4)
    return {
        "w_ih": jax.random.uniform(k[0], (hidden_size, fan_in), jnp.float32, -bound, bound),
        "b_ih": jax.random.uniform(k[1], (hidden_size,), jnp.float32, -bound, bound),
        "w_io": jax.random.uniform(k[2], (hidden_size, fan_in), jnp.float32, -bound, bound),
        "b_io": jax.random.uniform(k[3], (hidden_size,), jnp.float32, -bound, bound),
    }


def pack_params(raw, input_size, hidden_size):
    """Pack & pad params into the fused kernel layout.

    Columns [0:Hp) of the 2*Hp slab are the i2h outputs, [Hp:2*Hp) are i2o.
    Weights are split into the x-rows and h-rows of the concatenated input,
    pre-transposed to [in, out] and cast to bf16; padded rows/cols are zero.
    The bias carries the log-softmax padding mask: i2o padding lanes = -1e30
    (i2h padding lanes stay 0 so hidden padding lanes remain exactly zero)."""
    I, H = input_size, hidden_size
    Ip, Hp = _round_up(I, LANE), _round_up(H, LANE)

    wx = jnp.zeros((Ip, 2 * Hp), jnp.float32)
    wx = wx.at[:I, :H].set(raw["w_ih"][:, :I].T)
    wx = wx.at[:I, Hp:Hp + H].set(raw["w_io"][:, :I].T)

    wh = jnp.zeros((Hp, 2 * Hp), jnp.float32)
    wh = wh.at[:H, :H].set(raw["w_ih"][:, I:].T)
    wh = wh.at[:H, Hp:Hp + H].set(raw["w_io"][:, I:].T)

    b = jnp.zeros((1, 2 * Hp), jnp.float32)
    b = b.at[0, :H].set(raw["b_ih"])
    b = b.at[0, Hp:Hp + H].set(raw["b_io"])
    if Hp > H:
        b = b.at[0, Hp + H:].set(-1e30)   # bake the softmax padding mask in

    return {"wx": wx.astype(jnp.bfloat16),
            "wh": wh.astype(jnp.bfloat16),
            "b": b,
            "input_size": I, "hidden_size": H}


def rnn_sequence(xs, h0, packed, time_block=None):
    """xs: [T, B, I], h0: [B, H] -> (log_probs [T, B, H], final hidden [B, H]).

    Applies the torch RNN cell forward() sequentially over T timesteps inside
    one pallas_call (grid over Tb-sized time blocks)."""
    T, B, I = xs.shape
    H = h0.shape[1]
    assert I == packed["input_size"] and H == packed["hidden_size"]
    Ip, Hp = _round_up(I, LANE), _round_up(H, LANE)
    Bp = _round_up(B, SUBLANE)

    Tb = T if time_block is None else min(time_block, T)
    Tb = max(Tb, 1)
    nT = pl.cdiv(T, Tb)
    Tpad = nT * Tb

    # Pad + pre-cast x to bf16 (halves streaming DMA); flatten (t, b) so the
    # per-block input projection is one plain 2-D matmul in the kernel.
    xs_p = jnp.zeros((Tpad, Bp, Ip), jnp.bfloat16)
    xs_p = xs_p.at[:T, :B, :I].set(xs.astype(jnp.bfloat16))
    xs_flat = xs_p.reshape(Tpad * Bp, Ip)

    h0_p = jnp.zeros((Bp, Hp), jnp.float32).at[:B, :H].set(h0)

    kernel = functools.partial(rnn_seq_kernel, Tb=Tb, Bp=Bp, Hp=Hp, T=T)

    out_flat, hid_p = pl.pallas_call(
        kernel,
        out_shape=(
            jax.ShapeDtypeStruct((Tpad * Bp, Hp), jnp.float32),   # log-probs
            jax.ShapeDtypeStruct((Bp, Hp), jnp.float32),          # final hidden
        ),
        grid_spec=pltpu.PrefetchScalarGridSpec(
            num_scalar_prefetch=0,
            grid=(nT,),
            in_specs=[
                pl.BlockSpec((Tb * Bp, Ip), lambda t: (t, 0)),    # x block streamed
                pl.BlockSpec((Bp, Hp), lambda t: (0, 0)),         # h0 (loaded once)
                pl.BlockSpec((Ip, 2 * Hp), lambda t: (0, 0)),     # packed Wx (resident)
                pl.BlockSpec((Hp, 2 * Hp), lambda t: (0, 0)),     # packed Wh (resident)
                pl.BlockSpec((1, 2 * Hp), lambda t: (0, 0)),      # packed bias (resident)
            ],
            out_specs=(
                pl.BlockSpec((Tb * Bp, Hp), lambda t: (t, 0)),    # lane-dense out block
                pl.BlockSpec((Bp, Hp), lambda t: (0, 0)),         # resident hidden carry
            ),
            scratch_shapes=[
                pltpu.VMEM((Tb * Bp, 2 * Hp), jnp.float32),       # hoisted pre[t] block
            ],
        ),
        compiler_params=pltpu.CompilerParams(
            # Time-block axis carries the recurrence -> must stay sequential.
            dimension_semantics=("arbitrary",),
        ),
    )(xs_flat, h0_p, packed["wx"], packed["wh"], packed["b"])

    out = out_flat.reshape(Tpad, Bp, Hp)
    return out[:T, :B, :H], hid_p[:B, :H]


def rnn_forward(x, h, packed):
    """Single cell step, matching torch forward(): returns (log_probs, new_hidden)."""
    out, hid = rnn_sequence(x[None], h, packed)
    return out[0], hid


def reference_step(x, h, raw):
    """Pure-JAX reference for one torch forward() step, mirroring the kernel's
    bf16-operand / f32-accumulate matmul numerics."""
    comb = jnp.concatenate([x, h], axis=1).astype(jnp.bfloat16)
    hid = jnp.dot(comb, raw["w_ih"].T.astype(jnp.bfloat16),
                  preferred_element_type=jnp.float32) + raw["b_ih"]
    out = jnp.dot(comb, raw["w_io"].T.astype(jnp.bfloat16),
                  preferred_element_type=jnp.float32) + raw["b_io"]
    return jax.nn.log_softmax(out, axis=1), hid


if __name__ == "__main__":
    input_size, hidden_size, output_size = 16, 32, 32  # i2o -> hidden_size, per the torch spec
    batch, seq_len = 2, 8

    key = jax.random.PRNGKey(0)
    kx, kp = jax.random.split(key)

    xs = jax.random.normal(kx, (seq_len, batch, input_size), jnp.float32)
    h0 = jnp.zeros((batch, hidden_size), jnp.float32)   # init_hidden(), broadcast over batch

    raw = init_raw_params(kp, input_size, hidden_size)
    packed = pack_params(raw, input_size, hidden_size)

    # --- single step (the module's forward) ---
    out1, hid1 = rnn_forward(xs[0], h0, packed)
    jax.block_until_ready((out1, hid1))
    ref_out1, ref_hid1 = reference_step(xs[0], h0, raw)
    assert jnp.allclose(out1, ref_out1, atol=1e-4, rtol=1e-4), \
        float(jnp.max(jnp.abs(out1 - ref_out1)))
    assert jnp.allclose(hid1, ref_hid1, atol=1e-4, rtol=1e-4), \
        float(jnp.max(jnp.abs(hid1 - ref_hid1)))

    # --- whole sequence in a single kernel launch (one grid step, Tb = T) ---
    outs, hid_T = rnn_sequence(xs, h0, packed)
    jax.block_until_ready((outs, hid_T))

    ref_h = h0
    for t in range(seq_len):
        ref_o, ref_h = reference_step(xs[t], ref_h, raw)
        assert jnp.allclose(outs[t], ref_o, atol=1e-2, rtol=1e-2), \
            (t, float(jnp.max(jnp.abs(outs[t] - ref_o))))
    assert jnp.allclose(hid_T, ref_h, atol=1e-2, rtol=1e-2), \
        float(jnp.max(jnp.abs(hid_T - ref_h)))

    print("KERNEL_OK")
</pallas_src>

<mosaic_0001>
module attributes {stable_mosaic.version = 11 : i64} {
  func.func @rnn_seq_kernel(%arg0: i32, %arg1: memref<8x128xbf16, #tpu.memory_space<vmem>>, %arg2: memref<8x128xf32, #tpu.memory_space<vmem>>, %arg3: memref<128x256xbf16, #tpu.memory_space<vmem>>, %arg4: memref<128x256xbf16, #tpu.memory_space<vmem>>, %arg5: memref<1x256xf32, #tpu.memory_space<vmem>>, %arg6: memref<8x128xf32, #tpu.memory_space<vmem>>, %arg7: memref<8x128xf32, #tpu.memory_space<vmem>>, %arg8: memref<8x256xf32, #tpu.memory_space<vmem>>) attributes {dimension_semantics = [#tpu.dimension_semantics<arbitrary>], iteration_bounds = array<i64: 1>, scalar_prefetch = 0 : i64, scratch_operands = 1 : i64, tpu.core_type = #tpu.core_type<tc>, window_params = [{transform_indices = @transform_0, window_bounds = array<i64: 8, 128>}, {pipeline_mode = #tpu.pipeline_mode<synchronous>, transform_indices = @transform_1, window_bounds = array<i64: 8, 128>}, {pipeline_mode = #tpu.pipeline_mode<synchronous>, transform_indices = @transform_2, window_bounds = array<i64: 128, 256>}, {pipeline_mode = #tpu.pipeline_mode<synchronous>, transform_indices = @transform_3, window_bounds = array<i64: 128, 256>}, {pipeline_mode = #tpu.pipeline_mode<synchronous>, transform_indices = @transform_4, window_bounds = array<i64: 1, 256>}, {transform_indices = @transform_5, window_bounds = array<i64: 8, 128>}, {pipeline_mode = #tpu.pipeline_mode<synchronous>, transform_indices = @transform_6, window_bounds = array<i64: 8, 128>}]} {
    %c0_i32 = arith.constant 0 : i32
    %0 = arith.cmpi eq, %arg0, %c0_i32 : i32
    %1 = arith.extui %0 : i1 to i32
    %c0_i32_0 = arith.constant 0 : i32
    %2 = arith.cmpi ne, %1, %c0_i32_0 : i32
    scf.if %2 {
      %c0_20 = arith.constant 0 : index
      %c0_21 = arith.constant 0 : index
      %35 = vector.load %arg2[%c0_20, %c0_21] : memref<8x128xf32, #tpu.memory_space<vmem>>, vector<8x128xf32>
      %c0_22 = arith.constant 0 : index
      %c0_23 = arith.constant 0 : index
      %36 = vector.load %arg7[%c0_22, %c0_23] : memref<8x128xf32, #tpu.memory_space<vmem>>, vector<8x128xf32>
      tpu.vector_store %arg7[%c0_22, %c0_23], %35 {strides = array<i32>} : memref<8x128xf32, #tpu.memory_space<vmem>>, vector<8x128xf32>,
    } else {
    }
    %c0 = arith.constant 0 : index
    %c0_1 = arith.constant 0 : index
    %3 = vector.load %arg1[%c0, %c0_1] : memref<8x128xbf16, #tpu.memory_space<vmem>>, vector<8x128xbf16>
    %c0_2 = arith.constant 0 : index
    %c0_3 = arith.constant 0 : index
    %4 = vector.load %arg3[%c0_2, %c0_3] : memref<128x256xbf16, #tpu.memory_space<vmem>>, vector<128x256xbf16>
    %cst = arith.constant dense<0.000000e+00> : vector<8x256xf32>
    %5 = tpu.matmul %3, %4, %cst {dimension_numbers = #tpu.dot_dimension_numbers<[1], [0], [0], [1], [0, 0, 1, 1], [], []>} : vector<8x128xbf16>, vector<128x256xbf16>, vector<8x256xf32> -> vector<8x256xf32>
    %c0_4 = arith.constant 0 : index
    %c0_5 = arith.constant 0 : index
    %6 = vector.load %arg5[%c0_4, %c0_5] : memref<1x256xf32, #tpu.memory_space<vmem>>, vector<1x256xf32>
    %7 = vector.broadcast %6 : vector<1x256xf32> to vector<8x256xf32>
    %8 = arith.addf %5, %7 : vector<8x256xf32>
    %c0_6 = arith.constant 0 : index
    %c0_7 = arith.constant 0 : index
    %9 = vector.load %arg8[%c0_6, %c0_7] : memref<8x256xf32, #tpu.memory_space<vmem>>, vector<8x256xf32>
    tpu.vector_store %arg8[%c0_6, %c0_7], %8 {strides = array<i32>} : memref<8x256xf32, #tpu.memory_space<vmem>>, vector<8x256xf32>,
    %c0_8 = arith.constant 0 : index
    %c0_9 = arith.constant 0 : index
    %10 = vector.load %arg4[%c0_8, %c0_9] : memref<128x256xbf16, #tpu.memory_space<vmem>>, vector<128x256xbf16>
    %c0_10 = arith.constant 0 : index
    %c0_11 = arith.constant 0 : index
    %11 = vector.load %arg7[%c0_10, %c0_11] : memref<8x128xf32, #tpu.memory_space<vmem>>, vector<8x128xf32>
    %c0_i32_12 = arith.constant 0 : i32
    %c8_i32 = arith.constant 8 : i32
    %12 = arith.muli %c0_i32_12, %c8_i32 : i32
    %13 = tpu.assume_multiple %12, 8 : i32
    %14 = arith.index_cast %13 : i32 to index
    %c0_13 = arith.constant 0 : index
    %15 = vector.load %arg8[%14, %c0_13] : memref<8x256xf32, #tpu.memory_space<vmem>>, vector<8x256xf32>
    %16 = arith.truncf %11 : vector<8x128xf32> to vector<8x128xbf16>
    %cst_14 = arith.constant dense<0.000000e+00> : vector<8x256xf32>
    %17 = tpu.matmul %16, %10, %cst_14 {dimension_numbers = #tpu.dot_dimension_numbers<[1], [0], [0], [1], [0, 0, 1, 1], [], []>} : vector<8x128xbf16>, vector<128x256xbf16>, vector<8x256xf32> -> vector<8x256xf32>
    %18 = arith.addf %15, %17 : vector<8x256xf32>
    %19 = vector.extract_strided_slice %18 {offsets = [0, 0], sizes = [8, 128], strides = [1, 1]} : vector<8x256xf32> to vector<8x128xf32>
    %20 = vector.extract_strided_slice %18 {offsets = [0, 128], sizes = [8, 128], strides = [1, 1]} : vector<8x256xf32> to vector<8x128xf32>
    %cst_15 = arith.constant dense<0xFF800000> : vector<8xf32>
    %21 = vector.multi_reduction <maximumf>, %20, %cst_15 [1] : vector<8x128xf32> to vector<8xf32>
    %22 = vector.shape_cast %21 : vector<8xf32> to vector<8x1xf32>
    %23 = vector.broadcast %22 : vector<8x1xf32> to vector<8x128xf32>
    %24 = arith.subf %20, %23 : vector<8x128xf32>
    %25 = math.exp %24 : vector<8x128xf32>
    %cst_16 = arith.constant dense<0.000000e+00> : vector<8xf32>
    %26 = vector.multi_reduction <add>, %25, %cst_16 [1] : vector<8x128xf32> to vector<8xf32>
    %27 = vector.shape_cast %26 : vector<8xf32> to vector<8x1xf32>
    %28 = math.log %27 : vector<8x1xf32>
    %29 = arith.addf %22, %28 : vector<8x1xf32>
    %30 = vector.broadcast %29 : vector<8x1xf32> to vector<8x128xf32>
    %31 = arith.subf %20, %30 : vector<8x128xf32>
    %32 = arith.index_cast %13 : i32 to index
    %c0_17 = arith.constant 0 : index
    %33 = vector.load %arg6[%32, %c0_17] : memref<8x128xf32, #tpu.memory_space<vmem>>, vector<8x128xf32>
    tpu.vector_store %arg6[%32, %c0_17], %31 {strides = array<i32>} : memref<8x128xf32, #tpu.memory_space<vmem>>, vector<8x128xf32>,
    %c1_i32 = arith.constant 1 : i32
    %c0_18 = arith.constant 0 : index
    %c0_19 = arith.constant 0 : index
    %34 = vector.load %arg7[%c0_18, %c0_19] : memref<8x128xf32, #tpu.memory_space<vmem>>, vector<8x128xf32>
    tpu.vector_store %arg7[%c0_18, %c0_19], %19 {strides = array<i32>} : memref<8x128xf32, #tpu.memory_space<vmem>>, vector<8x128xf32>,
    return
  }
  func.func @transform_0(%arg0: i32) -> (i32, i32) {
    %c0_i32 = arith.constant 0 : i32
    %c0_i32_0 = arith.constant 0 : i32
    return %arg0, %c0_i32 : i32, i32
  }
  func.func @transform_1(%arg0: i32) -> (i32, i32) {
    %c0_i32 = arith.constant 0 : i32
    %c0_i32_0 = arith.constant 0 : i32
    %c0_i32_1 = arith.constant 0 : i32
    return %c0_i32, %c0_i32_0 : i32, i32
  }
  func.func @transform_2(%arg0: i32) -> (i32, i32) {
    %c0_i32 = arith.constant 0 : i32
    %c0_i32_0 = arith.constant 0 : i32
    %c0_i32_1 = arith.constant 0 : i32
    return %c0_i32, %c0_i32_0 : i32, i32
  }
  func.func @transform_3(%arg0: i32) -> (i32, i32) {
    %c0_i32 = arith.constant 0 : i32
    %c0_i32_0 = arith.constant 0 : i32
    %c0_i32_1 = arith.constant 0 : i32
    return %c0_i32, %c0_i32_0 : i32, i32
  }
  func.func @transform_4(%arg0: i32) -> (i32, i32) {
    %c0_i32 = arith.constant 0 : i32
    %c0_i32_0 = arith.constant 0 : i32
    %c0_i32_1 = arith.constant 0 : i32
    return %c0_i32, %c0_i32_0 : i32, i32
  }
  func.func @transform_5(%arg0: i32) -> (i32, i32) {
    %c0_i32 = arith.constant 0 : i32
    %c0_i32_0 = arith.constant 0 : i32
    return %arg0, %c0_i32 : i32, i32
  }
  func.func @transform_6(%arg0: i32) -> (i32, i32) {
    %c0_i32 = arith.constant 0 : i32
    %c0_i32_0 = arith.constant 0 : i32
    %c0_i32_1 = arith.constant 0 : i32
    return %c0_i32, %c0_i32_0 : i32, i32
  }
}

</mosaic_0001>

<bundles_post_ra>
// kernel: tpu_custom_call.1
= control target key start
LH: loop header
LB: loop body
LE: loop exit
PB: predicated region body
PF: predicated region fallthrough
CT: control target
= control target key end

     0   :  { %12 = vsyncpa [#allocation4], 0  ;;  %s782_s0 = inlined_call_operand.hbm [shape: bf16[8,128], index: 0, kind: input, shape index: {}]   ;;  %s783_s1 = inlined_call_operand.hbm [shape: f32[8,128], index: 1, kind: input, shape index: {}]   ;;  %s784_s2 = inlined_call_operand.hbm [shape: bf16[128,256], index: 2, kind: input, shape index: {}]   ;;  %s785_s3 = inlined_call_operand.hbm [shape: bf16[128,256], index: 3, kind: input, shape index: {}]   ;;  %s786_s4 = inlined_call_operand.vmem [shape: f32[1,256], index: 4, kind: input, shape index: {}]   ;;  %s787_s5 = inlined_call_operand.hbm [shape: f32[8,128], index: 5, kind: output, shape index: {0}]   ;;  %s788_s6 = inlined_call_operand.hbm [shape: f32[8,128], index: 6, kind: output, shape index: {1}]  }
   0x1   :  { %13 = vsyncpa [#allocation7], 0 }
   0x2   :  { %14 = vsyncpa [#allocation10], 0 }
   0x3   :  { %15 = vsyncpa [#allocation5], 0 }
   0x4   :  { %16 = vsyncpa [#allocation13], 0  ;;  %s663_s21 = smov [#allocation6]   ;;  %s664_s23 = smov [#allocation3]  }
   0x5   :  { %s33_s22 = sshll.u32 %s663_s21, 4  ;;  %s23_s24 = sshll.u32 %s664_s23, 4  ;;  %s34_s22 = int_to_ptr.vmem [resolvable:$true] %s33_s22  ;;  %s24_s24 = int_to_ptr.vmem [resolvable:$true] %s23_s24 }
   0x6   :  { %s521_s27 = scalar_lea.hbm %s783_s1, 128 }
   0x7   :  { %p522_p0 = scmp.ne.s32.totalorder %s783_s1, %s521_s27  ;;  %p525_p1 = scmp.lt.u32.totalorder %s521_s27, %s783_s1 }
   0x9   :  { %p527_p2 = pnand %p525_p1, %p522_p0 }
   0xb   :  { %530 = shalt.err (!%p527_p2)
}
   0xc   :  { %s531_s8 = scalar_lea.vmem %s34_s22, 128  ;;  %p536_p4 = scmp.lt.s32.totalorder %s34_s22, %s34_s22 }
   0xd   :  { %p532_p3 = scmp.ne.s32.totalorder %s34_s22, %s531_s8  ;;  %p537_p5 = scmp.lt.s32.totalorder %s531_s8, %s531_s8 }
   0xf   :  { %p538_p6 = por %p537_p5, %p536_p4 }
  0x11   :  { %p539_p7 = pnand %p538_p6, %p532_p3 }
  0x13   :  { %542 = shalt.err (!%p539_p7)
}
  0x14   :  { %36 = dma.hbm_to_vmem [thread:$0]  %s783_s1, 128, %s34_s22, [#allocation7]  }
  0x15   :  { %s543_s13 = scalar_lea.hbm %s782_s0, 64 }
  0x16   :  { %p544_p8 = scmp.ne.s32.totalorder %s782_s0, %s543_s13  ;;  %p547_p9 = scmp.lt.u32.totalorder %s543_s13, %s782_s0 }
  0x18   :  { %p549_p10 = pnand %p547_p9, %p544_p8 }
  0x1a   :  { %552 = shalt.err (!%p549_p10)
}
  0x1b   :  { %s553_s18 = scalar_lea.vmem %s24_s24, 64  ;;  %p558_p12 = scmp.lt.s32.totalorder %s24_s24, %s24_s24 }
  0x1c   :  { %p554_p11 = scmp.ne.s32.totalorder %s24_s24, %s553_s18  ;;  %p559_p13 = scmp.lt.s32.totalorder %s553_s18, %s553_s18 }
  0x1e   :  { %p560_p0 = por %p559_p13, %p558_p12 }
  0x20   :  { %p561_p1 = pnand %p560_p0, %p554_p11 }
  0x22   :  { %564 = shalt.err (!%p561_p1)
}
  0x23   :  { %26 = dma.hbm_to_vmem [thread:$0]  %s782_s0, 64, %s24_s24, [#allocation4]  }
  0x24   :  { %s665_s20 = smov [#allocation8]   ;;  %s565_s25 = scalar_lea.hbm %s784_s2, 2048 }
  0x25   :  { %s42_s21 = sshll.u32 %s665_s20, 4  ;;  %p566_p2 = scmp.ne.s32.totalorder %s784_s2, %s565_s25  ;;  %s43_s21 = int_to_ptr.vmem [resolvable:$true] %s42_s21 }
  0x26   :  { %p569_p3 = scmp.lt.u32.totalorder %s565_s25, %s784_s2 }
  0x28   :  { %p571_p4 = pnand %p569_p3, %p566_p2 }
  0x2a   :  { %574 = shalt.err (!%p571_p4)
}
  0x2b   :  { %s575_s30 = scalar_lea.vmem %s43_s21, 2048  ;;  %p580_p6 = scmp.lt.s32.totalorder %s43_s21, %s43_s21 }
  0x2c   :  { %p576_p5 = scmp.ne.s32.totalorder %s43_s21, %s575_s30  ;;  %p581_p7 = scmp.lt.s32.totalorder %s575_s30, %s575_s30 }
  0x2e   :  { %p582_p8 = por %p581_p7, %p580_p6 }
  0x30   :  { %p583_p9 = pnand %p582_p8, %p576_p5 }
  0x32   :  { %586 = shalt.err (!%p583_p9)
}
  0x33   :  { %s666_s0 = smov 128   ;;  %s667_s24 = smov 8  }
  0x34   :  { %48 = dma.hbm_to_vmem [thread:$0]  %s784_s2, 2048, %s43_s21, [#allocation7], %s666_s0, %s666_s0, %s667_s24  }
  0x35   :  { %s668_s9 = smov [#allocation9]   ;;  %s587_s13 = scalar_lea.hbm %s785_s3, 2048 }
  0x36   :  { %s54_s10 = sshll.u32 %s668_s9, 4  ;;  %p588_p10 = scmp.ne.s32.totalorder %s785_s3, %s587_s13  ;;  %s55_s10 = int_to_ptr.vmem [resolvable:$true] %s54_s10 }
  0x37   :  { %p591_p11 = scmp.lt.u32.totalorder %s587_s13, %s785_s3 }
  0x39   :  { %p593_p12 = pnand %p591_p11, %p588_p10 }
  0x3b   :  { %596 = shalt.err (!%p593_p12)
}
  0x3c   :  { %s597_s18 = scalar_lea.vmem %s55_s10, 2048  ;;  %p602_p0 = scmp.lt.s32.totalorder %s55_s10, %s55_s10 }
  0x3d   :  { %p598_p13 = scmp.ne.s32.totalorder %s55_s10, %s597_s18  ;;  %p603_p1 = scmp.lt.s32.totalorder %s597_s18, %s597_s18 }
  0x3f   :  { %p604_p2 = por %p603_p1, %p602_p0 }
  0x41   :  { %p605_p3 = pnand %p604_p2, %p598_p13 }
  0x43   :  { %608 = shalt.err (!%p605_p3)
}
  0x44   :  { %60 = dma.hbm_to_vmem [thread:$0]  %s785_s3, 2048, %s55_s10, [#allocation10], %s666_s0, %s666_s0, %s667_s24  }
  0x45   :  { %653 = dma.done.wait [#allocation4], 64  }
  0x46   :  { %654 = vsyncadd [#allocation4], 4294967232 }
  0x47   :  { %655 = dma.done.wait [#allocation7], 2176  }
  0x48   :  { %656 = vsyncadd [#allocation7], 4294965120 }
  0x49   :  { %657 = dma.done.wait [#allocation10], 2048  }
  0x4a   :  { %658 = vsyncadd [#allocation10], 4294965248  ;;  %v669_v0 = vmov 0   ;;  %v469_v1 = vld [vmem:[#allocation8 + $0x4] ss:$8 sps:$4 sm:$0xff]   ;;  %v80_v33 = vld [vmem:[#allocation6] sm:$0xff]  ;;  %v101_v36 = vlaneseq }
  0x4b   :  { %223 = vmatprep.mubr.bf16.mxu1 %v669_v0  ;;  %369 = vmatprep.mubr.bf16.mxu0 %v669_v0  ;;  %v471_v2 = vld [vmem:[#allocation9 + $0x4] ss:$8 sps:$4 sm:$0xff]   ;;  %v473_v3 = vld [vmem:[#allocation8] ss:$8 sps:$4 sm:$0xff]   ;;  %v475_v5 = vld [vmem:[#allocation8 + $0x14] ss:$8 sps:$4 sm:$0xff]   ;;  %v256_v34 = vpack.c.bf16 %v80_v33, %v80_v33 }
  0x4c   :  { %191 = vmatprep.subr.bf16.mxu1 %v469_v1  ;;  %v474_v4 = vld [vmem:[#allocation9] ss:$8 sps:$4 sm:$0xff]   ;;  %337 = vmatprep.subr.bf16.mxu0 %v471_v2  ;;  %v477_v6 = vld [vmem:[#allocation9 + $0x14] ss:$8 sps:$4 sm:$0xff]   ;;  %v479_v7 = vld [vmem:[#allocation8 + $0x10] ss:$8 sps:$4 sm:$0xff]  }
  0x4d   :  { %192 = vmatpush1.bf16.msra.mxu1 %v473_v3  ;;  %338 = vmatpush1.bf16.msra.mxu0 %v474_v4  ;;  %v480_v8 = vld [vmem:[#allocation9 + $0x10] ss:$8 sps:$4 sm:$0xff]   ;;  %v481_v9 = vld [vmem:[#allocation8 + $0x24] ss:$8 sps:$4 sm:$0xff]   ;;  %v485_v11 = vld [vmem:[#allocation8 + $0x20] ss:$8 sps:$4 sm:$0xff]  }
  0x4e   :  { %193 = vmatprep.subr.bf16.mxu1 %v475_v5  ;;  %339 = vmatprep.subr.bf16.mxu0 %v477_v6  ;;  %v483_v10 = vld [vmem:[#allocation9 + $0x24] ss:$8 sps:$4 sm:$0xff]   ;;  %v486_v12 = vld [vmem:[#allocation9 + $0x20] ss:$8 sps:$4 sm:$0xff]   ;;  %v487_v13 = vld [vmem:[#allocation8 + $0x34] ss:$8 sps:$4 sm:$0xff]  }
  0x4f   :  { %v489_v14 = vld [vmem:[#allocation9 + $0x34] ss:$8 sps:$4 sm:$0xff]   ;;  %v491_v15 = vld [vmem:[#allocation8 + $0x30] ss:$8 sps:$4 sm:$0xff]   ;;  %v493_v17 = vld [vmem:[#allocation8 + $0x44] ss:$8 sps:$4 sm:$0xff]  }
  0x50   :  { %v492_v16 = vld [vmem:[#allocation9 + $0x30] ss:$8 sps:$4 sm:$0xff]   ;;  %v495_v18 = vld [vmem:[#allocation9 + $0x44] ss:$8 sps:$4 sm:$0xff]   ;;  %v497_v19 = vld [vmem:[#allocation8 + $0x40] ss:$8 sps:$4 sm:$0xff]  }
  0x51   :  { %194 = vmatpush1.bf16.msra.mxu1 %v479_v7  ;;  %340 = vmatpush1.bf16.msra.mxu0 %v480_v8  ;;  %v498_v20 = vld [vmem:[#allocation9 + $0x40] ss:$8 sps:$4 sm:$0xff]   ;;  %v499_v21 = vld [vmem:[#allocation8 + $0x54] ss:$8 sps:$4 sm:$0xff]   ;;  %v503_v23 = vld [vmem:[#allocation8 + $0x50] ss:$8 sps:$4 sm:$0xff]  }
  0x52   :  { %195 = vmatprep.subr.bf16.mxu1 %v481_v9  ;;  %341 = vmatprep.subr.bf16.mxu0 %v483_v10  ;;  %v501_v22 = vld [vmem:[#allocation9 + $0x54] ss:$8 sps:$4 sm:$0xff]   ;;  %v504_v24 = vld [vmem:[#allocation9 + $0x50] ss:$8 sps:$4 sm:$0xff]   ;;  %v505_v25 = vld [vmem:[#allocation8 + $0x64] ss:$8 sps:$4 sm:$0xff]  }
  0x53   :  { %v507_v26 = vld [vmem:[#allocation9 + $0x64] ss:$8 sps:$4 sm:$0xff]   ;;  %v509_v27 = vld [vmem:[#allocation8 + $0x60] ss:$8 sps:$4 sm:$0xff]   ;;  %v511_v29 = vld [vmem:[#allocation8 + $0x74] ss:$8 sps:$4 sm:$0xff]  }
  0x54   :  { %v510_v28 = vld [vmem:[#allocation9 + $0x60] ss:$8 sps:$4 sm:$0xff]   ;;  %v513_v30 = vld [vmem:[#allocation9 + $0x74] ss:$8 sps:$4 sm:$0xff]   ;;  %v515_v31 = vld [vmem:[#allocation8 + $0x70] ss:$8 sps:$4 sm:$0xff]  }
  0x55   :  { %196 = vmatpush1.bf16.msra.mxu1 %v485_v11  ;;  %342 = vmatpush1.bf16.msra.mxu0 %v486_v12  ;;  %v516_v32 = vld [vmem:[#allocation9 + $0x70] ss:$8 sps:$4 sm:$0xff]   ;;  %v82_v35 = vld [vmem:[#allocation3] sm:$0xf]  ;;  %v102_v37 = vshrl.u32 %v101_v36, 7 }
  0x56   :  { %197 = vmatprep.subr.bf16.mxu1 %v487_v13  ;;  %343 = vmatprep.subr.bf16.mxu0 %v489_v14  ;;  %v99_v39 = vld [vmem:[%s786_s4] sm:$0x3]  ;;  %s670_s4 = smov [#allocation12]  }
  0x57   :  { %v103_v38 = vsub.s32 0, %v102_v37  ;;  %v107_v40 = vsub.s32 1, %v102_v37  ;;  %s409_s20 = sshll.u32 %s670_s4, 4  ;;  %s410_s20 = int_to_ptr.vmem [resolvable:$true] %s409_s20 }
  0x58   :  { %s609_s21 = scalar_lea.vmem %s410_s20, 128  ;;  %p614_p5 = scmp.lt.s32.totalorder %s410_s20, %s410_s20 }
  0x59   :  { %198 = vmatpush1.bf16.msra.mxu1 %v491_v15  ;;  %344 = vmatpush1.bf16.msra.mxu0 %v492_v16  ;;  %v104_v41 = vrot.slane %v99_v39, %v103_v38  ;;  %v108_v42 = vrot.slane %v99_v39, %v107_v40  ;;  %p610_p4 = scmp.ne.s32.totalorder %s410_s20, %s609_s21  ;;  %p615_p6 = scmp.lt.s32.totalorder %s609_s21, %s609_s21 }
  0x5a   :  { %199 = vmatprep.subr.bf16.mxu1 %v493_v17  ;;  %345 = vmatprep.subr.bf16.mxu0 %v495_v18 }
  0x5b   :  { %p616_p7 = por %p615_p6, %p614_p5 }
  0x5d   :  { %200 = vmatpush1.bf16.msra.mxu1 %v497_v19  ;;  %346 = vmatpush1.bf16.msra.mxu0 %v498_v20  ;;  %p617_p8 = pnand %p616_p7, %p610_p4 }
  0x5e   :  { %201 = vmatprep.subr.bf16.mxu1 %v499_v21  ;;  %347 = vmatprep.subr.bf16.mxu0 %v501_v22 }
  0x61   :  { %202 = vmatpush1.bf16.msra.mxu1 %v503_v23  ;;  %348 = vmatpush1.bf16.msra.mxu0 %v504_v24 }
  0x62   :  { %203 = vmatprep.subr.bf16.mxu1 %v505_v25  ;;  %349 = vmatprep.subr.bf16.mxu0 %v507_v26 }
  0x65   :  { %204 = vmatpush1.bf16.msra.mxu1 %v509_v27  ;;  %350 = vmatpush1.bf16.msra.mxu0 %v510_v28 }
  0x66   :  { %205 = vmatprep.subr.bf16.mxu1 %v511_v29  ;;  %351 = vmatprep.subr.bf16.mxu0 %v513_v30 }
  0x69   :  { %206 = vmatpush1.bf16.msra.mxu1 %v515_v31  ;;  %352 = vmatpush1.bf16.msra.mxu0 %v516_v32 }
  0x6c   :  { %224 = vmatmul.mubr.bf16.vlgmr.msra.gmra.mrb[0].mxu1 %v82_v35  ;;  %370 = vmatmul.mubr.bf16.vlgmr.msra.gmra.mrb[0].mxu0 %v256_v34 }
 0x13f   :  { %v225_v43 = vpop.f32.mrb[0].mxu1  ;;  %v371_v44 = vpop.f32.mrb[0].mxu0 }
 0x140   :  { %v226_v45 = vadd.f32 %v225_v43, %v104_v41  ;;  %v227_v46 = vpop.f32.mrb[1].mxu1  ;;  %v373_v47 = vpop.f32.mrb[1].mxu0 }
 0x141   :  { %v228_v48 = vadd.f32 %v227_v46, %v108_v42  ;;  %v229_v49 = vpop.f32.mrb[2].mxu1  ;;  %v375_v50 = vpop.f32.mrb[2].mxu0 }
 0x142   :  { %v378_v51 = vadd.f32 %v371_v44, %v226_v45  ;;  %v230_v52 = vpop.f32.mrb[3].mxu1  ;;  %v376_v53 = vpop.f32.mrb[3].mxu0 }
 0x143   :  { %v379_v54 = vadd.f32 %v373_v47, %v228_v48 }
 0x144   :  { %392 = vst [vmem:[#allocation12] sm:$0xff] %v378_v51 }
 0x145   :  { %380 = vmax.xlane.f32.xlu0 %v379_v54 }
 0x1d2   :  { %v381_v55 = vpop.xlane.xlu0 %380 }
 0x1d3   :  { %v382_v56 = vsub.f32 %v379_v54, %v381_v55 }
 0x1d5   :  { %v383_v57 = vmul.f32 1.442695, %v382_v56 }
 0x1d7   :  { %517 = vpow2.f32 %v383_v57 }
 0x1e1   :  { %v518_v58 = vpop.eup %517 }
 0x1e2   :  { %385 = vadd.xlane.f32.xlu0 %v518_v58 }
 0x1e3   :  { %620 = shalt.err (!%p617_p8)
}
 0x1e4   :  { %s621_s25 = scalar_lea.hbm %s788_s6, 128 }
 0x1e5   :  { %p622_p9 = scmp.ne.s32.totalorder %s788_s6, %s621_s25  ;;  %p625_p10 = scmp.lt.u32.totalorder %s621_s25, %s788_s6 }
 0x1e7   :  { %p627_p11 = pnand %p625_p10, %p622_p9 }
 0x1e9   :  { %630 = shalt.err (!%p627_p11)
}
 0x1ea   :  { %412 = dma.vmem_to_hbm [thread:$0]  %s410_s20, 128, %s788_s6, [#allocation13]  }
 0x1eb   :  { %s671_s24 = smov [#allocation11]  }
 0x1ec   :  { %s399_s7 = sshll.u32 %s671_s24, 4  ;;  %s400_s7 = int_to_ptr.vmem [resolvable:$true] %s399_s7 }
 0x1ed   :  { %s631_s8 = scalar_lea.vmem %s400_s7, 128  ;;  %p636_p13 = scmp.lt.s32.totalorder %s400_s7, %s400_s7 }
 0x1ee   :  { %p632_p12 = scmp.ne.s32.totalorder %s400_s7, %s631_s8  ;;  %p637_p0 = scmp.lt.s32.totalorder %s631_s8, %s631_s8 }
 0x1f0   :  { %p638_p1 = por %p637_p0, %p636_p13 }
 0x1f2   :  { %p639_p2 = pnand %p638_p1, %p632_p12 }
 0x26f   :  { %v386_v59 = vpop.xlane.xlu0 %385 }
 0x270   :  { %519 = vlog2.f32 %v386_v59 }
 0x27a   :  { %v520_v60 = vpop.eup %519 }
 0x27b   :  { %v388_v61 = vmul.f32 0.6931472, %v520_v60 }
 0x27d   :  { %v389_v62 = vadd.f32 %v388_v61, %v381_v55 }
 0x27f   :  { %v390_v63 = vsub.f32 %v379_v54, %v389_v62 }
 0x281   :  { %391 = vst [vmem:[#allocation11] sm:$0xff] %v390_v63 }
 0x282   :  { %642 = shalt.err (!%p639_p2)
}
 0x283   :  { %s643_s6 = scalar_lea.hbm %s787_s5, 128 }
 0x284   :  { %p644_p3 = scmp.ne.s32.totalorder %s787_s5, %s643_s6  ;;  %p647_p4 = scmp.lt.u32.totalorder %s643_s6, %s787_s5 }
 0x286   :  { %p649_p5 = pnand %p647_p4, %p644_p3 }
 0x288   :  { %652 = shalt.err (!%p649_p5)
}
 0x289   :  { %402 = dma.vmem_to_hbm [thread:$0]  %s400_s7, 128, %s787_s5, [#allocation5]  }
 0x28a   :  { %659 = dma.done.wait [#allocation5], 128  }
 0x28b   :  { %660 = vsyncadd [#allocation5], 4294967168 }
 0x28c   :  { %661 = dma.done.wait [#allocation13], 128  }
 0x28d   :  { %662 = vsyncadd [#allocation13], 4294967168 }
 0x28e   :  { %419 = vsyncpa [#allocation4], 1 }
 0x28f   :  { %420 = vsyncpa [#allocation7], 1 }
 0x290   :  { %421 = vsyncpa [#allocation10], 1 }
 0x291   :  { %422 = vsyncpa [#allocation5], 1 }
 0x292   :  { %423 = vsyncpa [#allocation13], 1 }

</bundles_post_ra>
